<compile_context>
chip_gen: v7x
topology: tpu7x:2x2x1
jax: 0.10.0
libtpu: 0.0.40
codegen_flags: <defaults>
</compile_context>

<pallas_src>
import functools

import jax
import jax.numpy as jnp
from jax import lax
from jax.experimental import pallas as pl
from jax.experimental.pallas import tpu as pltpu


# --------------------------------------------------------------------------
# Kernels
# --------------------------------------------------------------------------

def _bn_train_fused_kernel(x_ref, g_ref, b_ref, o_ref, mean_ref, var_ref, *,
                           eps, inv_m):
    """Single-pass: full (N, cb, HW) block resident; stats + normalize."""
    x = x_ref[...].astype(jnp.float32)                        # (N, cb, HW)
    s1 = jnp.sum(jnp.sum(x, axis=0), axis=-1, keepdims=True)  # (cb, 1)
    s2 = jnp.sum(jnp.sum(x * x, axis=0), axis=-1, keepdims=True)
    mean = s1 * inv_m
    var = s2 * inv_m - mean * mean
    # TODO(synk): E[x^2]-mean^2 can cancel in f32 when |mean| >> std; switch
    # to a two-pass centered variance if that regime matters.
    inv_std = lax.rsqrt(var + eps)                             # EUP, ~free
    scale = g_ref[...] * inv_std                               # (cb, 1)
    shift = b_ref[...] - mean * scale
    o_ref[...] = (x * scale[None] + shift[None]).astype(o_ref.dtype)
    mean_ref[...] = mean
    var_ref[...] = var


def _bn_stats_kernel(x_ref, mean_ref, var_ref, sum_sc, sq_sc, *, inv_m):
    """Pass 1 (tiled): accumulate per-channel sum / sumsq over HW tiles."""
    m = pl.program_id(1)

    @pl.when(m == 0)
    def _():
        sum_sc[...] = jnp.zeros_like(sum_sc)
        sq_sc[...] = jnp.zeros_like(sq_sc)

    x = x_ref[...].astype(jnp.float32)                         # (N, cb, hw_t)
    sum_sc[...] += jnp.sum(jnp.sum(x, axis=0), axis=-1, keepdims=True)
    sq_sc[...] += jnp.sum(jnp.sum(x * x, axis=0), axis=-1, keepdims=True)

    @pl.when(m == pl.num_programs(1) - 1)
    def _():
        mean = sum_sc[...] * inv_m
        mean_ref[...] = mean
        var_ref[...] = sq_sc[...] * inv_m - mean * mean


def _bn_scale_shift_kernel(x_ref, scale_ref, shift_ref, o_ref):
    """Pass 2 / eval: fused per-channel x * scale + shift."""
    x = x_ref[...].astype(jnp.float32)                         # (N, cb, hw_t)
    o_ref[...] = (x * scale_ref[...][None]
                  + shift_ref[...][None]).astype(o_ref.dtype)


# --------------------------------------------------------------------------
# Tile selection helpers
# --------------------------------------------------------------------------

def _sublane_multiple(dtype):
    # 8 rows/vreg for 32-bit, 16 for 16-bit, 32 for 8-bit dtypes.
    return 8 * max(1, 4 // jnp.dtype(dtype).itemsize)


def _choose_channel_block(C, pack, elems_per_channel_min, budget_elems):
    if C % pack != 0:
        return C                     # full-extent channel block (always legal)
    cb = pack
    while (C % (2 * cb) == 0
           and 2 * cb * elems_per_channel_min <= budget_elems
           and 2 * cb <= 256):
        cb *= 2
    return cb


def _choose_hw_tile(N, cb, C, HW, budget_elems):
    if HW % 128 != 0:
        # TODO(synk): non-128-multiple HW is taken as one full-extent (padded)
        # lane block; a masked multi-tile path could recover the bandwidth.
        return HW
    max_t = max(128, (budget_elems // max(1, N * cb)) // 128 * 128)
    hw_t = 128
    while 2 * hw_t <= max_t and HW % (2 * hw_t) == 0:
        hw_t *= 2
    # Expose >= 2 "parallel" grid steps for megacore when the channel grid
    # would otherwise be a single step.
    if (C // cb) == 1 and hw_t == HW and HW % 256 == 0:
        hw_t = HW // 2
    return hw_t


def _vmem_limit(block_elems, in_item, out_item, f32_temps):
    need = block_elems * (2 * in_item + 2 * out_item + 4 * f32_temps) + (1 << 20)
    return int(min(max(2 * need, 32 << 20), 48 << 20))


# --------------------------------------------------------------------------
# Wrapper
# --------------------------------------------------------------------------

def _scale_shift_call(x3, scale2, shift2, cb, hw_t):
    N, C, HW = x3.shape
    itemsize = jnp.dtype(x3.dtype).itemsize
    grid = (C // cb, HW // hw_t)
    x_spec = pl.BlockSpec((N, cb, hw_t), lambda c, m: (0, c, m))
    vec_spec = pl.BlockSpec((cb, 1), lambda c, m: (c, 0))
    return pl.pallas_call(
        _bn_scale_shift_kernel,
        out_shape=jax.ShapeDtypeStruct((N, C, HW), x3.dtype),
        grid=grid,
        in_specs=[x_spec, vec_spec, vec_spec],
        out_specs=x_spec,
        compiler_params=pltpu.CompilerParams(
            dimension_semantics=("parallel", "parallel"),
            vmem_limit_bytes=_vmem_limit(N * cb * hw_t, itemsize, itemsize, 1)),
    )(x3, scale2, shift2)


def batchnorm2d_forward(x, gamma, beta, running_mean, running_var, *,
                        eps=1e-5, momentum=0.9, train=True,
                        max_block_elems=1 << 20):
    """Pallas BatchNorm2d forward.

    Returns (out, new_running_mean, new_running_var); running stats are
    unchanged in eval mode (matching the reference module).
    """
    N, C, H, W = x.shape
    HW = H * W
    M = N * HW
    itemsize = jnp.dtype(x.dtype).itemsize
    pack = _sublane_multiple(x.dtype)

    # Free, memory-contiguous view of NCHW; no transposes anywhere.
    x3 = x.reshape(N, C, HW)
    g2 = gamma.reshape(C, 1).astype(jnp.float32)
    b2 = beta.reshape(C, 1).astype(jnp.float32)

    if train:
        # Fused single-pass path when a full (N, cb, HW) channel block fits.
        cb_fused = _choose_channel_block(C, pack, N * HW, max_block_elems)
        fused_ok = N * cb_fused * HW <= max_block_elems

        if fused_ok:
            grid = (C // cb_fused,)
            x_spec = pl.BlockSpec((N, cb_fused, HW), lambda c: (0, c, 0))
            vec_spec = pl.BlockSpec((cb_fused, 1), lambda c: (c, 0))
            out3, mean2, var2 = pl.pallas_call(
                functools.partial(_bn_train_fused_kernel,
                                  eps=eps, inv_m=1.0 / M),
                out_shape=(jax.ShapeDtypeStruct((N, C, HW), x.dtype),
                           jax.ShapeDtypeStruct((C, 1), jnp.float32),
                           jax.ShapeDtypeStruct((C, 1), jnp.float32)),
                grid=grid,
                in_specs=[x_spec, vec_spec, vec_spec],
                out_specs=(x_spec, vec_spec, vec_spec),
                compiler_params=pltpu.CompilerParams(
                    dimension_semantics=("parallel",),
                    vmem_limit_bytes=_vmem_limit(
                        N * cb_fused * HW, itemsize, itemsize, 2)),
            )(x3, g2, b2)
        else:
            # Tiled two-pass path: stats (sum / sumsq) then scale+shift.
            elems_per_channel_min = N * (HW if HW % 128 != 0 else 128)
            cb = _choose_channel_block(C, pack, elems_per_channel_min,
                                       max_block_elems)
            hw_t = _choose_hw_tile(N, cb, C, HW, max_block_elems)

            grid = (C // cb, HW // hw_t)
            x_spec = pl.BlockSpec((N, cb, hw_t), lambda c, m: (0, c, m))
            vec_spec = pl.BlockSpec((cb, 1), lambda c, m: (c, 0))
            mean2, var2 = pl.pallas_call(
                functools.partial(_bn_stats_kernel, inv_m=1.0 / M),
                out_shape=(jax.ShapeDtypeStruct((C, 1), jnp.float32),
                           jax.ShapeDtypeStruct((C, 1), jnp.float32)),
                grid=grid,
                in_specs=[x_spec],
                out_specs=(vec_spec, vec_spec),
                scratch_shapes=[pltpu.VMEM((cb, 1), jnp.float32),
                                pltpu.VMEM((cb, 1), jnp.float32)],
                compiler_params=pltpu.CompilerParams(
                    dimension_semantics=("parallel", "arbitrary"),
                    vmem_limit_bytes=_vmem_limit(
                        N * cb * hw_t, itemsize, 4, 2)),
            )(x3)

            # Fold stats + gamma/beta into per-channel scale/shift (tiny C ops).
            inv_std = lax.rsqrt(var2 + eps)
            scale2 = g2 * inv_std
            shift2 = b2 - mean2 * scale2
            out3 = _scale_shift_call(x3, scale2, shift2, cb, hw_t)

        sample_mean = mean2.reshape(C)
        sample_var = var2.reshape(C)
        new_running_mean = momentum * running_mean + (1.0 - momentum) * sample_mean
        new_running_var = momentum * running_var + (1.0 - momentum) * sample_var
    else:
        # Eval: fold running stats + gamma/beta into scale/shift outside.
        elems_per_channel_min = N * (HW if HW % 128 != 0 else 128)
        cb = _choose_channel_block(C, pack, elems_per_channel_min,
                                   max_block_elems)
        hw_t = _choose_hw_tile(N, cb, C, HW, max_block_elems)

        inv_std = lax.rsqrt(running_var.reshape(C, 1).astype(jnp.float32) + eps)
        scale2 = g2 * inv_std
        shift2 = b2 - running_mean.reshape(C, 1).astype(jnp.float32) * scale2
        out3 = _scale_shift_call(x3, scale2, shift2, cb, hw_t)

        new_running_mean = running_mean
        new_running_var = running_var

    out = out3.reshape(N, C, H, W)     # free reshape back to NCHW
    return out, new_running_mean, new_running_var


# --------------------------------------------------------------------------
# Demo / correctness check
# --------------------------------------------------------------------------

def _jnp_reference(x, gamma, beta, mean_c, var_c, eps):
    C = x.shape[1]
    return (gamma.reshape(1, C, 1, 1)
            * (x - mean_c.reshape(1, C, 1, 1))
            / jnp.sqrt(var_c.reshape(1, C, 1, 1) + eps)
            + beta.reshape(1, C, 1, 1))


if __name__ == "__main__":
    key = jax.random.PRNGKey(0)
    eps = 1e-5
    momentum = 0.9

    # ---- main test: small NCHW, fused single-pass train path ----
    N, C, H, W = 2, 4, 16, 16
    x = jax.random.normal(key, (N, C, H, W), dtype=jnp.float32)
    gamma = jnp.linspace(0.5, 1.5, C, dtype=jnp.float32)
    beta = jnp.linspace(-0.2, 0.3, C, dtype=jnp.float32)
    running_mean = jnp.zeros((C,), dtype=jnp.float32)
    running_var = jnp.ones((C,), dtype=jnp.float32)

    out_train, rm, rv = batchnorm2d_forward(
        x, gamma, beta, running_mean, running_var,
        eps=eps, momentum=momentum, train=True)
    out_train = jax.block_until_ready(out_train)
    rm = jax.block_until_ready(rm)
    rv = jax.block_until_ready(rv)

    ref_mean = jnp.mean(x, axis=(0, 2, 3))
    ref_var = jnp.var(x, axis=(0, 2, 3))
    ref_out = _jnp_reference(x, gamma, beta, ref_mean, ref_var, eps)
    assert out_train.shape == x.shape
    assert bool(jnp.allclose(out_train, ref_out, rtol=1e-4, atol=1e-4))
    assert bool(jnp.allclose(
        rm, momentum * running_mean + (1 - momentum) * ref_mean,
        rtol=1e-4, atol=1e-5))
    assert bool(jnp.allclose(
        rv, momentum * running_var + (1 - momentum) * ref_var,
        rtol=1e-4, atol=1e-5))

    # ---- eval mode (tiled scale/shift kernel, uses running stats) ----
    out_eval, rm2, rv2 = batchnorm2d_forward(
        x, gamma, beta, rm, rv, eps=eps, momentum=momentum, train=False)
    out_eval = jax.block_until_ready(out_eval)
    ref_eval = _jnp_reference(x, gamma, beta, rm, rv, eps)
    assert bool(jnp.allclose(out_eval, ref_eval, rtol=1e-4, atol=1e-4))
    assert bool(jnp.allclose(rm2, rm)) and bool(jnp.allclose(rv2, rv))

    # ---- extra test: force the tiled two-pass train path (tiny VMEM budget) ----
    N2, C2, H2, W2 = 2, 8, 16, 16
    x2 = jax.random.normal(jax.random.PRNGKey(1), (N2, C2, H2, W2),
                           dtype=jnp.float32)
    gamma2 = jnp.linspace(0.7, 1.3, C2, dtype=jnp.float32)
    beta2 = jnp.linspace(-0.1, 0.4, C2, dtype=jnp.float32)
    rmean2 = jnp.zeros((C2,), dtype=jnp.float32)
    rvar2 = jnp.ones((C2,), dtype=jnp.float32)

    out_t2, rm_t2, rv_t2 = batchnorm2d_forward(
        x2, gamma2, beta2, rmean2, rvar2,
        eps=eps, momentum=momentum, train=True, max_block_elems=2048)
    out_t2 = jax.block_until_ready(out_t2)
    rm_t2 = jax.block_until_ready(rm_t2)
    rv_t2 = jax.block_until_ready(rv_t2)

    ref_mean2 = jnp.mean(x2, axis=(0, 2, 3))
    ref_var2 = jnp.var(x2, axis=(0, 2, 3))
    ref_out2 = _jnp_reference(x2, gamma2, beta2, ref_mean2, ref_var2, eps)
    assert bool(jnp.allclose(out_t2, ref_out2, rtol=1e-4, atol=1e-4))
    assert bool(jnp.allclose(
        rm_t2, momentum * rmean2 + (1 - momentum) * ref_mean2,
        rtol=1e-4, atol=1e-5))
    assert bool(jnp.allclose(
        rv_t2, momentum * rvar2 + (1 - momentum) * ref_var2,
        rtol=1e-4, atol=1e-5))

    print("KERNEL_OK")
</pallas_src>

<mosaic_0001>
module attributes {stable_mosaic.version = 11 : i64} {
  func.func @_bn_train_fused_kernel(%arg0: i32, %arg1: memref<2x4x256xf32, #tpu.memory_space<vmem>>, %arg2: memref<4x1xf32, #tpu.memory_space<vmem>>, %arg3: memref<4x1xf32, #tpu.memory_space<vmem>>, %arg4: memref<2x4x256xf32, #tpu.memory_space<vmem>>, %arg5: memref<4x1xf32, #tpu.memory_space<vmem>>, %arg6: memref<4x1xf32, #tpu.memory_space<vmem>>) attributes {dimension_semantics = [#tpu.dimension_semantics<parallel>], iteration_bounds = array<i64: 1>, scalar_prefetch = 0 : i64, scratch_operands = 0 : i64, tpu.core_type = #tpu.core_type<tc>, window_params = [{transform_indices = @transform_0, window_bounds = array<i64: 2, 4, 256>}, {transform_indices = @transform_1, window_bounds = array<i64: 4, 1>}, {transform_indices = @transform_2, window_bounds = array<i64: 4, 1>}, {transform_indices = @transform_3, window_bounds = array<i64: 2, 4, 256>}, {transform_indices = @transform_4, window_bounds = array<i64: 4, 1>}, {transform_indices = @transform_5, window_bounds = array<i64: 4, 1>}]} {
    %c0 = arith.constant 0 : index
    %c0_0 = arith.constant 0 : index
    %c0_1 = arith.constant 0 : index
    %0 = vector.load %arg1[%c0, %c0_0, %c0_1] : memref<2x4x256xf32, #tpu.memory_space<vmem>>, vector<2x4x256xf32>
    %cst = arith.constant dense<0.000000e+00> : vector<4x256xf32>
    %1 = vector.multi_reduction <add>, %0, %cst [0] : vector<2x4x256xf32> to vector<4x256xf32>
    %cst_2 = arith.constant dense<0.000000e+00> : vector<4xf32>
    %2 = vector.multi_reduction <add>, %1, %cst_2 [1] : vector<4x256xf32> to vector<4xf32>
    %3 = vector.shape_cast %2 : vector<4xf32> to vector<4x1xf32>
    %4 = arith.mulf %0, %0 : vector<2x4x256xf32>
    %cst_3 = arith.constant dense<0.000000e+00> : vector<4x256xf32>
    %5 = vector.multi_reduction <add>, %4, %cst_3 [0] : vector<2x4x256xf32> to vector<4x256xf32>
    %cst_4 = arith.constant dense<0.000000e+00> : vector<4xf32>
    %6 = vector.multi_reduction <add>, %5, %cst_4 [1] : vector<4x256xf32> to vector<4xf32>
    %7 = vector.shape_cast %6 : vector<4xf32> to vector<4x1xf32>
    %cst_5 = arith.constant 0.001953125 : f32
    %8 = vector.broadcast %cst_5 : f32 to vector<4x1xf32>
    %9 = arith.mulf %3, %8 : vector<4x1xf32>
    %cst_6 = arith.constant 0.001953125 : f32
    %10 = vector.broadcast %cst_6 : f32 to vector<4x1xf32>
    %11 = arith.mulf %7, %10 : vector<4x1xf32>
    %12 = arith.mulf %9, %9 : vector<4x1xf32>
    %13 = arith.subf %11, %12 : vector<4x1xf32>
    %cst_7 = arith.constant 9.99999974E-6 : f32
    %14 = vector.broadcast %cst_7 : f32 to vector<4x1xf32>
    %15 = arith.addf %13, %14 : vector<4x1xf32>
    %16 = math.rsqrt %15 : vector<4x1xf32>
    %c0_8 = arith.constant 0 : index
    %c0_9 = arith.constant 0 : index
    %17 = vector.load %arg2[%c0_8, %c0_9] : memref<4x1xf32, #tpu.memory_space<vmem>>, vector<4x1xf32>
    %18 = arith.mulf %17, %16 : vector<4x1xf32>
    %c0_10 = arith.constant 0 : index
    %c0_11 = arith.constant 0 : index
    %19 = vector.load %arg3[%c0_10, %c0_11] : memref<4x1xf32, #tpu.memory_space<vmem>>, vector<4x1xf32>
    %20 = arith.mulf %9, %18 : vector<4x1xf32>
    %21 = arith.subf %19, %20 : vector<4x1xf32>
    %22 = vector.shape_cast %18 : vector<4x1xf32> to vector<1x4x1xf32>
    %23 = vector.broadcast %22 : vector<1x4x1xf32> to vector<2x4x256xf32>
    %24 = arith.mulf %0, %23 : vector<2x4x256xf32>
    %25 = vector.shape_cast %21 : vector<4x1xf32> to vector<1x4x1xf32>
    %26 = vector.broadcast %25 : vector<1x4x1xf32> to vector<2x4x256xf32>
    %27 = arith.addf %24, %26 : vector<2x4x256xf32>
    %c0_12 = arith.constant 0 : index
    %c0_13 = arith.constant 0 : index
    %c0_14 = arith.constant 0 : index
    %28 = vector.load %arg4[%c0_12, %c0_13, %c0_14] : memref<2x4x256xf32, #tpu.memory_space<vmem>>, vector<2x4x256xf32>
    tpu.vector_store %arg4[%c0_12, %c0_13, %c0_14], %27 {strides = array<i32>} : memref<2x4x256xf32, #tpu.memory_space<vmem>>, vector<2x4x256xf32>,
    %c0_15 = arith.constant 0 : index
    %c0_16 = arith.constant 0 : index
    %29 = vector.load %arg5[%c0_15, %c0_16] : memref<4x1xf32, #tpu.memory_space<vmem>>, vector<4x1xf32>
    tpu.vector_store %arg5[%c0_15, %c0_16], %9 {strides = array<i32>} : memref<4x1xf32, #tpu.memory_space<vmem>>, vector<4x1xf32>,
    %c0_17 = arith.constant 0 : index
    %c0_18 = arith.constant 0 : index
    %30 = vector.load %arg6[%c0_17, %c0_18] : memref<4x1xf32, #tpu.memory_space<vmem>>, vector<4x1xf32>
    tpu.vector_store %arg6[%c0_17, %c0_18], %13 {strides = array<i32>} : memref<4x1xf32, #tpu.memory_space<vmem>>, vector<4x1xf32>,
    return
  }
  func.func @transform_0(%arg0: i32) -> (i32, i32, i32) {
    %c0_i32 = arith.constant 0 : i32
    %c0_i32_0 = arith.constant 0 : i32
    %c0_i32_1 = arith.constant 0 : i32
    return %c0_i32, %arg0, %c0_i32_0 : i32, i32, i32
  }
  func.func @transform_1(%arg0: i32) -> (i32, i32) {
    %c0_i32 = arith.constant 0 : i32
    %c0_i32_0 = arith.constant 0 : i32
    return %arg0, %c0_i32 : i32, i32
  }
  func.func @transform_2(%arg0: i32) -> (i32, i32) {
    %c0_i32 = arith.constant 0 : i32
    %c0_i32_0 = arith.constant 0 : i32
    return %arg0, %c0_i32 : i32, i32
  }
  func.func @transform_3(%arg0: i32) -> (i32, i32, i32) {
    %c0_i32 = arith.constant 0 : i32
    %c0_i32_0 = arith.constant 0 : i32
    %c0_i32_1 = arith.constant 0 : i32
    return %c0_i32, %arg0, %c0_i32_0 : i32, i32, i32
  }
  func.func @transform_4(%arg0: i32) -> (i32, i32) {
    %c0_i32 = arith.constant 0 : i32
    %c0_i32_0 = arith.constant 0 : i32
    return %arg0, %c0_i32 : i32, i32
  }
  func.func @transform_5(%arg0: i32) -> (i32, i32) {
    %c0_i32 = arith.constant 0 : i32
    %c0_i32_0 = arith.constant 0 : i32
    return %arg0, %c0_i32 : i32, i32
  }
}

</mosaic_0001>

<bundles_post_ra>
// kernel: tpu_custom_call.1
= control target key start
LH: loop header
LB: loop body
LE: loop exit
PB: predicated region body
PF: predicated region fallthrough
CT: control target
= control target key end

     0   :  { %11 = vsyncpa [#allocation3], 0  ;;  %s290_s0 = inlined_call_operand.hbm [shape: f32[2,4,256], index: 0, kind: input, shape index: {}]   ;;  %s291_s1 = inlined_call_operand.vmem [shape: f32[4,1], index: 1, kind: input, shape index: {}]   ;;  %s292_s2 = inlined_call_operand.vmem [shape: f32[4,1], index: 2, kind: input, shape index: {}]   ;;  %s293_s3 = inlined_call_operand.hbm [shape: f32[2,4,256], index: 3, kind: output, shape index: {0}]   ;;  %s294_s4 = inlined_call_operand.vmem [shape: f32[4,1], index: 4, kind: output, shape index: {1}]   ;;  %s295_s5 = inlined_call_operand.vmem [shape: f32[4,1], index: 5, kind: output, shape index: {2}]  }
   0x1   :  { %12 = vsyncpa [#allocation4], 0  ;;  %s200_s18 = smov [#allocation2]   ;;  %s152_s22 = scalar_lea.hbm %s290_s0, 256 }
   0x2   :  { %s18_s19 = sshll.u32 %s200_s18, 4  ;;  %p153_p0 = scmp.ne.s32.totalorder %s290_s0, %s152_s22  ;;  %s19_s19 = int_to_ptr.vmem [resolvable:$true] %s18_s19 }
   0x3   :  { %p156_p1 = scmp.lt.u32.totalorder %s152_s22, %s290_s0 }
   0x5   :  { %p158_p2 = pnand %p156_p1, %p153_p0 }
   0x7   :  { %161 = shalt.err (!%p158_p2)
}
   0x8   :  { %s162_s27 = scalar_lea.vmem %s19_s19, 256  ;;  %p167_p4 = scmp.lt.s32.totalorder %s19_s19, %s19_s19 }
   0x9   :  { %p163_p3 = scmp.ne.s32.totalorder %s19_s19, %s162_s27  ;;  %p168_p5 = scmp.lt.s32.totalorder %s162_s27, %s162_s27 }
   0xb   :  { %p169_p6 = por %p168_p5, %p167_p4 }
   0xd   :  { %p170_p7 = pnand %p169_p6, %p163_p3 }
   0xf   :  { %173 = shalt.err (!%p170_p7)
}
  0x10   :  { %s201_s28 = smov 128   ;;  %s202_s29 = smov 8  }
  0x11   :  { %24 = dma.hbm_to_vmem [thread:$0]  %s290_s0, 256, %s19_s19, [#allocation3], %s201_s28, %s201_s28, %s202_s29  }
  0x12   :  { %196 = dma.done.wait [#allocation3], 256  }
  0x13   :  { %197 = vsyncadd [#allocation3], 4294967040  ;;  %vm40_vm0 = vcmask 1043456   ;;  %v32_v0 = vld [vmem:[#allocation2] sm:$0xff]  ;;  %v33_v1 = vld [vmem:[#allocation2 + $0x8] sm:$0xff]  ;;  %v203_v26 = vmov 0   ;;  %v89_v42 = vlaneseq }
  0x14   :  { %v36_v2 = vcombine.high %v32_v0, %v32_v0  ;;  %v37_v3 = vcombine.high %v33_v1, %v33_v1  ;;  %v41_v4 = vsel %vm40_vm0, %v32_v0, 0.0  ;;  %v42_v5 = vsel %vm40_vm0, %v33_v1, 0.0  ;;  %146 = vset.pattern.permute.xlu1 %v203_v26  ;;  %147 = vset.pattern.permute.xlu0 %v203_v26  ;;  %v77_v34 = vld [vmem:[%s291_s1] sm:$0xf]  ;;  %s205_s1 = smov [#allocation5]  }
  0x15   :  { %v43_v6 = vadd.f32 %v42_v5, %v41_v4  ;;  %v52_v7 = vmul.f32 %v32_v0, %v32_v0  ;;  %v53_v8 = vmul.f32 %v33_v1, %v33_v1  ;;  %vm112_vm1 = vcmask 3072   ;;  %v79_v37 = vld [vmem:[%s292_s2] sm:$0xf] }
  0x16   :  { %v44_v9 = vsel %vm40_vm0, %v36_v2, 0.0  ;;  %v45_v10 = vsel %vm40_vm0, %v37_v3, 0.0  ;;  %v204_v40 = vmov 839922192   ;;  %v90_v44 = vshrl.u32 %v89_v42, 7 }
  0x17   :  { %v46_v11 = vadd.f32 %v45_v10, %v44_v9  ;;  %v47_v12 = vsel %vm40_vm0, %v43_v6, 0.0  ;;  %v56_v13 = vcombine.high %v52_v7, %v52_v7  ;;  %v57_v14 = vcombine.high %v53_v8, %v53_v8 }
  0x18   :  { %v60_v15 = vsel %vm40_vm0, %v52_v7, 0.0  ;;  %v61_v16 = vsel %vm40_vm0, %v53_v8, 0.0  ;;  %v87_v41 = vunpack.c.l.s4 %v204_v40 }
  0x19   :  { %v48_v17 = vsel %vm40_vm0, %v46_v11, 0.0  ;;  %v62_v18 = vadd.f32 %v61_v16, %v60_v15  ;;  %v63_v19 = vsel %vm40_vm0, %v56_v13, 0.0  ;;  %v64_v20 = vsel %vm40_vm0, %v57_v14, 0.0 }
  0x1a   :  { %v49_v21 = vadd.f32 %v48_v17, %v47_v12  ;;  %v65_v22 = vadd.f32 %v64_v20, %v63_v19  ;;  %v88_v43 = vunpack.c.0.s8 %v87_v41 }
  0x1b   :  { %v66_v23 = vsel %vm40_vm0, %v62_v18, 0.0 }
  0x1c   :  { %50 = vadd.xlane.f32.xlu0 %v49_v21  ;;  %v67_v24 = vsel %vm40_vm0, %v65_v22, 0.0  ;;  %v91_v45 = vsub.s32 %v88_v43, %v90_v44 }
  0x1d   :  { %v68_v25 = vadd.f32 %v67_v24, %v66_v23 }
  0x20   :  { %69 = vadd.xlane.f32.xlu0 %v68_v25 }
  0xa9   :  { %v51_v27 = vpop.xlane.xlu0 %50 }
  0xaa   :  { %v71_v28 = vmul.f32 0.001953125, %v51_v27 }
  0xac   :  { %113 = vst.msk [vmem:[%s294_s4] sm:$0xf] %vm112_vm1, %v71_v28  ;;  %v73_v30 = vmul.f32 %v71_v28, %v71_v28  ;;  %s120_s4 = sshll.u32 %s205_s1, 4  ;;  %s121_s4 = int_to_ptr.vmem [resolvable:$true] %s120_s4 }
  0xad   :  { %v70_v29 = vpop.xlane.xlu0 %69  ;;  %s174_s2 = scalar_lea.vmem %s121_s4, 256  ;;  %p179_p9 = scmp.lt.s32.totalorder %s121_s4, %s121_s4 }
  0xae   :  { %v72_v31 = vmul.f32 0.001953125, %v70_v29  ;;  %p175_p8 = scmp.ne.s32.totalorder %s121_s4, %s174_s2  ;;  %p180_p10 = scmp.lt.s32.totalorder %s174_s2, %s174_s2 }
  0xb0   :  { %v74_v32 = vsub.f32 %v72_v31, %v73_v30  ;;  %p181_p11 = por %p180_p10, %p179_p9 }
  0xb2   :  { %v75_v33 = vadd.f32 1e-05, %v74_v32  ;;  %114 = vst.msk [vmem:[%s295_s5] sm:$0xf] %vm112_vm1, %v74_v32  ;;  %p182_p12 = pnand %p181_p11, %p175_p8 }
  0xb4   :  { %150 = vrsqrt.f32 %v75_v33 }
  0xbe   :  { %v151_v35 = vpop.eup %150 }
  0xbf   :  { %v78_v36 = vmul.f32 %v151_v35, %v77_v34 }
  0xc1   :  { %84 = vperm.xlu1 %146, %v78_v36   ;;  %v80_v38 = vmul.f32 %v78_v36, %v71_v28 }
  0xc3   :  { %v81_v39 = vsub.f32 %v79_v37, %v80_v38 }
  0xc5   :  { %98 = vperm.xlu1 %146, %v81_v39  }
 0x140   :  { %v85_v46 = vpop.permute.xlu1 %84 }
 0x141   :  { %v92_v47 = vrot.slane %v85_v46, %v91_v45 }
 0x143   :  { %v94_v49 = vmul.f32 %v92_v47, %v32_v0  ;;  %v95_v50 = vmul.f32 %v92_v47, %v33_v1 }
 0x144   :  { %v99_v48 = vpop.permute.xlu1 %98 }
 0x145   :  { %v106_v51 = vrot.slane %v99_v48, %v91_v45 }
 0x147   :  { %v108_v52 = vadd.f32 %v106_v51, %v94_v49  ;;  %v109_v53 = vadd.f32 %v106_v51, %v95_v50 }
 0x149   :  { %110 = vst [vmem:[#allocation5] sm:$0xff] %v108_v52  ;;  %111 = vst [vmem:[#allocation5 + $0x8] sm:$0xff] %v109_v53 }
 0x14a   :  { %185 = shalt.err (!%p182_p12)
}
 0x14b   :  { %s186_s15 = scalar_lea.hbm %s293_s3, 256 }
 0x14c   :  { %p187_p13 = scmp.ne.s32.totalorder %s293_s3, %s186_s15  ;;  %p190_p0 = scmp.lt.u32.totalorder %s186_s15, %s293_s3 }
 0x14e   :  { %p192_p1 = pnand %p190_p0, %p187_p13 }
 0x150   :  { %195 = shalt.err (!%p192_p1)
}
 0x151   :  { %126 = dma.vmem_to_hbm [thread:$0]  %s121_s4, 256, %s293_s3, [#allocation4], %s201_s28, %s201_s28, %s202_s29  }
 0x152   :  { %198 = dma.done.wait [#allocation4], 256  }
 0x153   :  { %199 = vsyncadd [#allocation4], 4294967040 }
 0x154   :  { %138 = vsyncpa [#allocation3], 1 }
 0x155   :  { %139 = vsyncpa [#allocation4], 1 }

</bundles_post_ra>
